<compile_context>
chip_gen: v6e
topology: v6e:2x2x1
jax: 0.10.0
libtpu: 0.0.40
codegen_flags: <defaults>
</compile_context>

<pallas_src>
import jax
import jax.numpy as jnp
import numpy as np
from jax import lax
from jax.experimental import pallas as pl
from jax.experimental.pallas import tpu as pltpu


def _make_kernel(H, W, K, C, C_out, pad, Bt, lw_pad):
    Hp = H + 2 * pad
    WC = W * C
    WCo = W * C_out

    def kernel(x_ref, wtap_ref, w1_ref, out_ref, xp_ref, cat_ref):
        # x_ref:    (Bt, H, W*C)          activations, fused channels-last
        # wtap_ref: (K*K, W*C)      f32   depthwise taps tiled along W
        # w1_ref:   (2*W*C, W*C_out) bf16 stacked block-diagonal 1x1 weights
        # out_ref:  (Bt, H, W*C_out)
        # xp_ref:   (Hp, lw_pad)    f32   per-image padded buffer
        # cat_ref:  (Bt*H, 2*W*C)   f32   fused matmul LHS: [x_normalized | x]

        # Zero the padded scratch once per grid step; only the interior
        # [pad:pad+H, 0:W*C] is (re)written per image, the border stays zero.
        xp_ref[...] = jnp.zeros((Hp, lw_pad), jnp.float32)

        x_all = x_ref[...].astype(jnp.float32)                     # (Bt, H, W*C)
        # Original x fills the upper lane half of the matmul LHS; one
        # block-wide store keeps the half-tile (misaligned) store count at 1.
        cat_ref[:, WC:2 * WC] = x_all.reshape(Bt * H, WC)

        # Hoisted tap-weight sublane broadcasts: K*K per grid step, not per image.
        wt = wtap_ref[...]                                         # (K*K, W*C)
        wrows = [jnp.broadcast_to(wt[t:t + 1, :], (H, WC)) for t in range(K * K)]

        for b in range(Bt):                                        # Bt static & small
            # Lane-aligned interior store, then one XLU roll builds the
            # left/right zero-padded view (trailing zeros wrap to the left pad).
            xp_ref[pad:pad + H, 0:WC] = x_all[b]
            xpad = pltpu.roll(xp_ref[...], pad * C, 1)             # (Hp, lw_pad)

            # kj lane-shifts hoisted out of the ki loop; shared by the tap FMAs
            # and the sum-of-squares box filter.
            views = [xpad[:, kj * C:kj * C + WC] for kj in range(K)]   # (Hp, W*C)

            # Depthwise (group) conv, static K*K unroll.
            acc = jnp.zeros((H, WC), jnp.float32)
            for kj in range(K):
                v = views[kj]
                for ki in range(K):
                    acc = acc + v[ki:ki + H, :] * wrows[ki * K + kj]

            # Norm conv (all-ones kernel) == separable box filter on x^2.
            row = views[0] * views[0]
            for kj in range(1, K):
                row = row + views[kj] * views[kj]                  # (Hp, W*C)
            ssq = row[0:H, :]
            for ki in range(1, K):
                ssq = ssq + row[ki:ki + H, :]                      # (H, W*C)

            xn = acc * lax.rsqrt(ssq + 1e-8)                       # EUP rsqrt
            cat_ref[b * H:(b + 1) * H, 0:WC] = xn                  # aligned store

        # Fused 1x1 conv: single MXU pass, bf16 operands, f32 accumulation.
        y = jnp.dot(cat_ref[...].astype(jnp.bfloat16), w1_ref[...],
                    preferred_element_type=jnp.float32)            # (Bt*H, W*C_out)

        # Per-image, per-out-channel spatial mean removal:
        # sublane sum over H, then log2(W) roll-and-add lane reduction with
        # shifts that are multiples of C_out -> every lane holds its channel's
        # full H*W sum.  All f32, no MXU.
        inv_hw = 1.0 / (H * W)
        for b in range(Bt):
            yb = y[b * H:(b + 1) * H, :]                           # (H, W*C_out)
            s = jnp.sum(yb, axis=0, keepdims=True)                 # (1, W*C_out)
            shift = C_out
            while shift < WCo:
                s = s + pltpu.roll(s, shift, 1)
                shift *= 2
            out_ref[b] = (yb - s * inv_hw).astype(out_ref.dtype)   # lane-dense store

    return kernel


def mean_res_norm_conv2d(x_nchw, w_dw, w_1x1, *, kernel_size=3, stride=1,
                         padding=1, block_batch=None):
    """x_nchw: (B,C,H,W); w_dw: (C,1,K,K); w_1x1: (C_out, 2C, 1, 1)."""
    B, C, H, W = x_nchw.shape
    K = kernel_size
    pad = padding
    C_out = w_1x1.shape[0]

    if stride != 1 or K != 2 * pad + 1:
        # TODO(synk): bilinear F.interpolate branch (conv output != input spatial).
        raise NotImplementedError("only stride=1 'same' convs (stretch path) supported")
    if W & (W - 1):
        raise NotImplementedError("W must be a power of two for the lane roll-reduce")

    WC, WCo = W * C, W * C_out
    Hp, Wp = H + 2 * pad, W + 2 * pad
    lw_pad = ((Wp * C + 127) // 128) * 128          # lane width of the padded scratch

    # ---- parameter prep (idempotent per-channel L2 weight normalization) ----
    norms = jnp.sqrt(jnp.sum(w_dw.reshape(C, -1) ** 2, axis=1))
    w_dw_n = w_dw / norms.reshape(C, 1, 1, 1)
    wk = jnp.transpose(w_dw_n[:, 0, :, :], (1, 2, 0))               # (K, K, C)
    w_taps = jnp.tile(wk.reshape(K * K, 1, C), (1, W, 1)).reshape(K * K, WC)
    w_taps = w_taps.astype(jnp.float32)

    # Fused 1x1 weight for the [x_normalized | x] lane layout:
    # rows [0,WC) multiply x_normalized, rows [WC,2WC) multiply x.  Stored bf16
    # (DEFAULT MXU precision truncates operands to bf16 anyway).
    w1 = jnp.transpose(w_1x1[:, :, 0, 0], (1, 0))                   # (2C, C_out)
    eye_w = jnp.eye(W, dtype=jnp.float32)
    w_fused = jnp.concatenate(
        [jnp.kron(eye_w, w1[C:]),                                   # x_normalized part
         jnp.kron(eye_w, w1[:C])],                                  # x part
        axis=0).astype(jnp.bfloat16)                                # (2*W*C, W*C_out)

    # ---- batch blocking: fill MXU rows / amortize per-grid-step overhead ----
    if block_batch is None:
        bt_cap = max(1, 256 // H)                                   # target Bt*H ~ 256
        block_batch = max(d for d in range(1, B + 1) if B % d == 0 and d <= bt_cap)
    Bt = block_batch
    assert B % Bt == 0

    # Lane-dense fused input/output views (layout plumbing in the wrapper).
    x_fused = jnp.transpose(x_nchw, (0, 2, 3, 1)).reshape(B, H, WC)

    kernel = _make_kernel(H, W, K, C, C_out, pad, Bt, lw_pad)
    out_fused = pl.pallas_call(
        kernel,
        out_shape=jax.ShapeDtypeStruct((B, H, WCo), x_nchw.dtype),
        grid_spec=pltpu.PrefetchScalarGridSpec(
            num_scalar_prefetch=0,
            grid=(B // Bt,),
            in_specs=[
                pl.BlockSpec((Bt, H, WC), lambda i: (i, 0, 0)),
                pl.BlockSpec((K * K, WC), lambda i: (0, 0)),
                pl.BlockSpec((2 * WC, WCo), lambda i: (0, 0)),
            ],
            out_specs=pl.BlockSpec((Bt, H, WCo), lambda i: (i, 0, 0)),
            scratch_shapes=[
                pltpu.VMEM((Hp, lw_pad), jnp.float32),      # per-image padded buffer
                pltpu.VMEM((Bt * H, 2 * WC), jnp.float32),  # fused 1x1 LHS
            ],
        ),
        # Batch blocks are fully independent -> shard across TCs on v7x.
        compiler_params=pltpu.CompilerParams(dimension_semantics=("parallel",)),
    )(x_fused, w_taps, w_fused)

    return jnp.transpose(out_fused.reshape(B, H, W, C_out), (0, 3, 1, 2))  # NCHW


def reference(x, w_dw, w_1x1, padding=1):
    """Pure-JAX reference mirroring the PyTorch forward (NCHW, full f32)."""
    B, C, H, W = x.shape
    norms = jnp.sqrt(jnp.sum(w_dw.reshape(C, -1) ** 2, axis=1))
    w = w_dw / norms.reshape(C, 1, 1, 1)
    dn = ("NCHW", "OIHW", "NCHW")
    p = [(padding, padding)] * 2
    x_group = lax.conv_general_dilated(x, w, (1, 1), p, dimension_numbers=dn,
                                       feature_group_count=C,
                                       precision=lax.Precision.HIGHEST)
    x_square = lax.conv_general_dilated(x * x, jnp.ones_like(w_dw), (1, 1), p,
                                        dimension_numbers=dn, feature_group_count=C,
                                        precision=lax.Precision.HIGHEST) + 1e-8
    x_normalized = x_group / jnp.sqrt(x_square)
    cat = jnp.concatenate([x, x_normalized], axis=1)
    y = lax.conv_general_dilated(cat, w_1x1, (1, 1), [(0, 0)] * 2,
                                 dimension_numbers=dn,
                                 precision=lax.Precision.HIGHEST)
    return y - jnp.mean(y, axis=(2, 3), keepdims=True)


if __name__ == "__main__":
    key = jax.random.PRNGKey(0)
    k1, k2, k3 = jax.random.split(key, 3)
    B, C_in, H, W = 2, 4, 16, 16
    C_out, K, pad = 8, 3, 1

    x = jax.random.normal(k1, (B, C_in, H, W), jnp.float32)
    # Deterministic synthetic parameters (module __init__ shapes):
    #   group_conv.weight: (C_in, 1, K, K); norm_conv.weight == ones (fixed);
    #   out_1x1_conv.weight: (C_out, 2*C_in, 1, 1)
    w_dw = jax.random.normal(k2, (C_in, 1, K, K), jnp.float32)
    w_1x1 = 0.1 * jax.random.normal(k3, (C_out, 2 * C_in, 1, 1), jnp.float32)

    out = mean_res_norm_conv2d(x, w_dw, w_1x1, kernel_size=K, padding=pad)
    out = jax.block_until_ready(out)

    ref = reference(x, w_dw, w_1x1, padding=pad)
    # The fused 1x1 conv runs with bf16 MXU operands (== DEFAULT precision
    # truncation); the mean removal and all elementwise math are f32.  The
    # tolerance absorbs worst-case bf16 operand rounding vs the f32 HIGHEST
    # reference (typical error is well under 1e-3).
    np.testing.assert_allclose(np.asarray(out), np.asarray(ref), rtol=2e-3, atol=5e-3)
    print("KERNEL_OK")
</pallas_src>

<mosaic_0001>
module attributes {stable_mosaic.version = 11 : i64} {
  func.func @kernel(%arg0: i32, %arg1: memref<2x16x64xf32, #tpu.memory_space<vmem>>, %arg2: memref<9x64xf32, #tpu.memory_space<vmem>>, %arg3: memref<128x128xbf16, #tpu.memory_space<vmem>>, %arg4: memref<2x16x128xf32, #tpu.memory_space<vmem>>, %arg5: memref<18x128xf32, #tpu.memory_space<vmem>>, %arg6: memref<32x128xf32, #tpu.memory_space<vmem>>) attributes {dimension_semantics = [#tpu.dimension_semantics<parallel>], iteration_bounds = array<i64: 1>, scalar_prefetch = 0 : i64, scratch_operands = 2 : i64, tpu.core_type = #tpu.core_type<tc>, window_params = [{transform_indices = @transform_0, window_bounds = array<i64: 2, 16, 64>}, {pipeline_mode = #tpu.pipeline_mode<synchronous>, transform_indices = @transform_1, window_bounds = array<i64: 9, 64>}, {pipeline_mode = #tpu.pipeline_mode<synchronous>, transform_indices = @transform_2, window_bounds = array<i64: 128, 128>}, {transform_indices = @transform_3, window_bounds = array<i64: 2, 16, 128>}]} {
    %cst = arith.constant 0.000000e+00 : f32
    %0 = vector.broadcast %cst : f32 to vector<18x128xf32>
    %c0 = arith.constant 0 : index
    %c0_0 = arith.constant 0 : index
    %1 = vector.load %arg5[%c0, %c0_0] : memref<18x128xf32, #tpu.memory_space<vmem>>, vector<18x128xf32>
    tpu.vector_store %arg5[%c0, %c0_0], %0 {strides = array<i32>} : memref<18x128xf32, #tpu.memory_space<vmem>>, vector<18x128xf32>,
    %c0_1 = arith.constant 0 : index
    %c0_2 = arith.constant 0 : index
    %c0_3 = arith.constant 0 : index
    %2 = vector.load %arg1[%c0_1, %c0_2, %c0_3] : memref<2x16x64xf32, #tpu.memory_space<vmem>>, vector<2x16x64xf32>
    %3 = vector.shape_cast %2 : vector<2x16x64xf32> to vector<32x64xf32>
    %c0_4 = arith.constant 0 : index
    %c64 = arith.constant 64 : index
    %4 = vector.load %arg6[%c0_4, %c64] : memref<32x128xf32, #tpu.memory_space<vmem>>, vector<32x64xf32>
    tpu.vector_store %arg6[%c0_4, %c64], %3 {strides = array<i32>} : memref<32x128xf32, #tpu.memory_space<vmem>>, vector<32x64xf32>,
    %c0_5 = arith.constant 0 : index
    %c0_6 = arith.constant 0 : index
    %5 = vector.load %arg2[%c0_5, %c0_6] : memref<9x64xf32, #tpu.memory_space<vmem>>, vector<9x64xf32>
    %6 = vector.extract_strided_slice %5 {offsets = [0, 0], sizes = [1, 64], strides = [1, 1]} : vector<9x64xf32> to vector<1x64xf32>
    %7 = vector.shape_cast %6 : vector<1x64xf32> to vector<1x64xf32>
    %8 = vector.broadcast %7 : vector<1x64xf32> to vector<16x64xf32>
    %9 = vector.extract_strided_slice %5 {offsets = [1, 0], sizes = [1, 64], strides = [1, 1]} : vector<9x64xf32> to vector<1x64xf32>
    %10 = vector.shape_cast %9 : vector<1x64xf32> to vector<1x64xf32>
    %11 = vector.broadcast %10 : vector<1x64xf32> to vector<16x64xf32>
    %12 = vector.extract_strided_slice %5 {offsets = [2, 0], sizes = [1, 64], strides = [1, 1]} : vector<9x64xf32> to vector<1x64xf32>
    %13 = vector.shape_cast %12 : vector<1x64xf32> to vector<1x64xf32>
    %14 = vector.broadcast %13 : vector<1x64xf32> to vector<16x64xf32>
    %15 = vector.extract_strided_slice %5 {offsets = [3, 0], sizes = [1, 64], strides = [1, 1]} : vector<9x64xf32> to vector<1x64xf32>
    %16 = vector.shape_cast %15 : vector<1x64xf32> to vector<1x64xf32>
    %17 = vector.broadcast %16 : vector<1x64xf32> to vector<16x64xf32>
    %18 = vector.extract_strided_slice %5 {offsets = [4, 0], sizes = [1, 64], strides = [1, 1]} : vector<9x64xf32> to vector<1x64xf32>
    %19 = vector.shape_cast %18 : vector<1x64xf32> to vector<1x64xf32>
    %20 = vector.broadcast %19 : vector<1x64xf32> to vector<16x64xf32>
    %21 = vector.extract_strided_slice %5 {offsets = [5, 0], sizes = [1, 64], strides = [1, 1]} : vector<9x64xf32> to vector<1x64xf32>
    %22 = vector.shape_cast %21 : vector<1x64xf32> to vector<1x64xf32>
    %23 = vector.broadcast %22 : vector<1x64xf32> to vector<16x64xf32>
    %24 = vector.extract_strided_slice %5 {offsets = [6, 0], sizes = [1, 64], strides = [1, 1]} : vector<9x64xf32> to vector<1x64xf32>
    %25 = vector.shape_cast %24 : vector<1x64xf32> to vector<1x64xf32>
    %26 = vector.broadcast %25 : vector<1x64xf32> to vector<16x64xf32>
    %27 = vector.extract_strided_slice %5 {offsets = [7, 0], sizes = [1, 64], strides = [1, 1]} : vector<9x64xf32> to vector<1x64xf32>
    %28 = vector.shape_cast %27 : vector<1x64xf32> to vector<1x64xf32>
    %29 = vector.broadcast %28 : vector<1x64xf32> to vector<16x64xf32>
    %30 = vector.extract_strided_slice %5 {offsets = [8, 0], sizes = [1, 64], strides = [1, 1]} : vector<9x64xf32> to vector<1x64xf32>
    %31 = vector.shape_cast %30 : vector<1x64xf32> to vector<1x64xf32>
    %32 = vector.broadcast %31 : vector<1x64xf32> to vector<16x64xf32>
    %33 = vector.extract_strided_slice %2 {offsets = [0, 0, 0], sizes = [1, 16, 64], strides = [1, 1, 1]} : vector<2x16x64xf32> to vector<1x16x64xf32>
    %34 = vector.shape_cast %33 : vector<1x16x64xf32> to vector<16x64xf32>
    %c1 = arith.constant 1 : index
    %c0_7 = arith.constant 0 : index
    %35 = vector.load %arg5[%c1, %c0_7] : memref<18x128xf32, #tpu.memory_space<vmem>>, vector<16x64xf32>
    tpu.vector_store %arg5[%c1, %c0_7], %34 {strides = array<i32>} : memref<18x128xf32, #tpu.memory_space<vmem>>, vector<16x64xf32>,
    %c0_8 = arith.constant 0 : index
    %c0_9 = arith.constant 0 : index
    %36 = vector.load %arg5[%c0_8, %c0_9] : memref<18x128xf32, #tpu.memory_space<vmem>>, vector<18x128xf32>
    %c4_i32 = arith.constant 4 : i32
    %37 = tpu.dynamic_rotate %36 by %c4_i32 dim 1 : vector<18x128xf32>, i32 -> vector<18x128xf32>
    %38 = vector.extract_strided_slice %37 {offsets = [0, 0], sizes = [18, 64], strides = [1, 1]} : vector<18x128xf32> to vector<18x64xf32>
    %39 = vector.extract_strided_slice %37 {offsets = [0, 4], sizes = [18, 64], strides = [1, 1]} : vector<18x128xf32> to vector<18x64xf32>
    %40 = vector.extract_strided_slice %37 {offsets = [0, 8], sizes = [18, 64], strides = [1, 1]} : vector<18x128xf32> to vector<18x64xf32>
    %cst_10 = arith.constant 0.000000e+00 : f32
    %41 = vector.broadcast %cst_10 : f32 to vector<16x64xf32>
    %42 = vector.extract_strided_slice %38 {offsets = [0, 0], sizes = [16, 64], strides = [1, 1]} : vector<18x64xf32> to vector<16x64xf32>
    %43 = arith.mulf %42, %8 : vector<16x64xf32>
    %44 = arith.addf %41, %43 : vector<16x64xf32>
    %45 = vector.extract_strided_slice %38 {offsets = [1, 0], sizes = [16, 64], strides = [1, 1]} : vector<18x64xf32> to vector<16x64xf32>
    %46 = arith.mulf %45, %17 : vector<16x64xf32>
    %47 = arith.addf %44, %46 : vector<16x64xf32>
    %48 = vector.extract_strided_slice %38 {offsets = [2, 0], sizes = [16, 64], strides = [1, 1]} : vector<18x64xf32> to vector<16x64xf32>
    %49 = arith.mulf %48, %26 : vector<16x64xf32>
    %50 = arith.addf %47, %49 : vector<16x64xf32>
    %51 = vector.extract_strided_slice %39 {offsets = [0, 0], sizes = [16, 64], strides = [1, 1]} : vector<18x64xf32> to vector<16x64xf32>
    %52 = arith.mulf %51, %11 : vector<16x64xf32>
    %53 = arith.addf %50, %52 : vector<16x64xf32>
    %54 = vector.extract_strided_slice %39 {offsets = [1, 0], sizes = [16, 64], strides = [1, 1]} : vector<18x64xf32> to vector<16x64xf32>
    %55 = arith.mulf %54, %20 : vector<16x64xf32>
    %56 = arith.addf %53, %55 : vector<16x64xf32>
    %57 = vector.extract_strided_slice %39 {offsets = [2, 0], sizes = [16, 64], strides = [1, 1]} : vector<18x64xf32> to vector<16x64xf32>
    %58 = arith.mulf %57, %29 : vector<16x64xf32>
    %59 = arith.addf %56, %58 : vector<16x64xf32>
    %60 = vector.extract_strided_slice %40 {offsets = [0, 0], sizes = [16, 64], strides = [1, 1]} : vector<18x64xf32> to vector<16x64xf32>
    %61 = arith.mulf %60, %14 : vector<16x64xf32>
    %62 = arith.addf %59, %61 : vector<16x64xf32>
    %63 = vector.extract_strided_slice %40 {offsets = [1, 0], sizes = [16, 64], strides = [1, 1]} : vector<18x64xf32> to vector<16x64xf32>
    %64 = arith.mulf %63, %23 : vector<16x64xf32>
    %65 = arith.addf %62, %64 : vector<16x64xf32>
    %66 = vector.extract_strided_slice %40 {offsets = [2, 0], sizes = [16, 64], strides = [1, 1]} : vector<18x64xf32> to vector<16x64xf32>
    %67 = arith.mulf %66, %32 : vector<16x64xf32>
    %68 = arith.addf %65, %67 : vector<16x64xf32>
    %69 = arith.mulf %38, %38 : vector<18x64xf32>
    %70 = arith.mulf %39, %39 : vector<18x64xf32>
    %71 = arith.addf %69, %70 : vector<18x64xf32>
    %72 = arith.mulf %40, %40 : vector<18x64xf32>
    %73 = arith.addf %71, %72 : vector<18x64xf32>
    %74 = vector.extract_strided_slice %73 {offsets = [0, 0], sizes = [16, 64], strides = [1, 1]} : vector<18x64xf32> to vector<16x64xf32>
    %75 = vector.extract_strided_slice %73 {offsets = [1, 0], sizes = [16, 64], strides = [1, 1]} : vector<18x64xf32> to vector<16x64xf32>
    %76 = arith.addf %74, %75 : vector<16x64xf32>
    %77 = vector.extract_strided_slice %73 {offsets = [2, 0], sizes = [16, 64], strides = [1, 1]} : vector<18x64xf32> to vector<16x64xf32>
    %78 = arith.addf %76, %77 : vector<16x64xf32>
    %cst_11 = arith.constant 9.99999993E-9 : f32
    %79 = vector.broadcast %cst_11 : f32 to vector<16x64xf32>
    %80 = arith.addf %78, %79 : vector<16x64xf32>
    %81 = math.rsqrt %80 : vector<16x64xf32>
    %82 = arith.mulf %68, %81 : vector<16x64xf32>
    %c0_12 = arith.constant 0 : index
    %c0_13 = arith.constant 0 : index
    %83 = vector.load %arg6[%c0_12, %c0_13] : memref<32x128xf32, #tpu.memory_space<vmem>>, vector<16x64xf32>
    tpu.vector_store %arg6[%c0_12, %c0_13], %82 {strides = array<i32>} : memref<32x128xf32, #tpu.memory_space<vmem>>, vector<16x64xf32>,
    %84 = vector.extract_strided_slice %2 {offsets = [1, 0, 0], sizes = [1, 16, 64], strides = [1, 1, 1]} : vector<2x16x64xf32> to vector<1x16x64xf32>
    %85 = vector.shape_cast %84 : vector<1x16x64xf32> to vector<16x64xf32>
    %c1_14 = arith.constant 1 : index
    %c0_15 = arith.constant 0 : index
    %86 = vector.load %arg5[%c1_14, %c0_15] : memref<18x128xf32, #tpu.memory_space<vmem>>, vector<16x64xf32>
    tpu.vector_store %arg5[%c1_14, %c0_15], %85 {strides = array<i32>} : memref<18x128xf32, #tpu.memory_space<vmem>>, vector<16x64xf32>,
    %c0_16 = arith.constant 0 : index
    %c0_17 = arith.constant 0 : index
    %87 = vector.load %arg5[%c0_16, %c0_17] : memref<18x128xf32, #tpu.memory_space<vmem>>, vector<18x128xf32>
    %c4_i32_18 = arith.constant 4 : i32
    %88 = tpu.dynamic_rotate %87 by %c4_i32_18 dim 1 : vector<18x128xf32>, i32 -> vector<18x128xf32>
    %89 = vector.extract_strided_slice %88 {offsets = [0, 0], sizes = [18, 64], strides = [1, 1]} : vector<18x128xf32> to vector<18x64xf32>
    %90 = vector.extract_strided_slice %88 {offsets = [0, 4], sizes = [18, 64], strides = [1, 1]} : vector<18x128xf32> to vector<18x64xf32>
    %91 = vector.extract_strided_slice %88 {offsets = [0, 8], sizes = [18, 64], strides = [1, 1]} : vector<18x128xf32> to vector<18x64xf32>
    %cst_19 = arith.constant 0.000000e+00 : f32
    %92 = vector.broadcast %cst_19 : f32 to vector<16x64xf32>
    %93 = vector.extract_strided_slice %89 {offsets = [0, 0], sizes = [16, 64], strides = [1, 1]} : vector<18x64xf32> to vector<16x64xf32>
    %94 = arith.mulf %93, %8 : vector<16x64xf32>
    %95 = arith.addf %92, %94 : vector<16x64xf32>
    %96 = vector.extract_strided_slice %89 {offsets = [1, 0], sizes = [16, 64], strides = [1, 1]} : vector<18x64xf32> to vector<16x64xf32>
    %97 = arith.mulf %96, %17 : vector<16x64xf32>
    %98 = arith.addf %95, %97 : vector<16x64xf32>
    %99 = vector.extract_strided_slice %89 {offsets = [2, 0], sizes = [16, 64], strides = [1, 1]} : vector<18x64xf32> to vector<16x64xf32>
    %100 = arith.mulf %99, %26 : vector<16x64xf32>
    %101 = arith.addf %98, %100 : vector<16x64xf32>
    %102 = vector.extract_strided_slice %90 {offsets = [0, 0], sizes = [16, 64], strides = [1, 1]} : vector<18x64xf32> to vector<16x64xf32>
    %103 = arith.mulf %102, %11 : vector<16x64xf32>
    %104 = arith.addf %101, %103 : vector<16x64xf32>
    %105 = vector.extract_strided_slice %90 {offsets = [1, 0], sizes = [16, 64], strides = [1, 1]} : vector<18x64xf32> to vector<16x64xf32>
    %106 = arith.mulf %105, %20 : vector<16x64xf32>
    %107 = arith.addf %104, %106 : vector<16x64xf32>
    %108 = vector.extract_strided_slice %90 {offsets = [2, 0], sizes = [16, 64], strides = [1, 1]} : vector<18x64xf32> to vector<16x64xf32>
    %109 = arith.mulf %108, %29 : vector<16x64xf32>
    %110 = arith.addf %107, %109 : vector<16x64xf32>
    %111 = vector.extract_strided_slice %91 {offsets = [0, 0], sizes = [16, 64], strides = [1, 1]} : vector<18x64xf32> to vector<16x64xf32>
    %112 = arith.mulf %111, %14 : vector<16x64xf32>
    %113 = arith.addf %110, %112 : vector<16x64xf32>
    %114 = vector.extract_strided_slice %91 {offsets = [1, 0], sizes = [16, 64], strides = [1, 1]} : vector<18x64xf32> to vector<16x64xf32>
    %115 = arith.mulf %114, %23 : vector<16x64xf32>
    %116 = arith.addf %113, %115 : vector<16x64xf32>
    %117 = vector.extract_strided_slice %91 {offsets = [2, 0], sizes = [16, 64], strides = [1, 1]} : vector<18x64xf32> to vector<16x64xf32>
    %118 = arith.mulf %117, %32 : vector<16x64xf32>
    %119 = arith.addf %116, %118 : vector<16x64xf32>
    %120 = arith.mulf %89, %89 : vector<18x64xf32>
    %121 = arith.mulf %90, %90 : vector<18x64xf32>
    %122 = arith.addf %120, %121 : vector<18x64xf32>
    %123 = arith.mulf %91, %91 : vector<18x64xf32>
    %124 = arith.addf %122, %123 : vector<18x64xf32>
    %125 = vector.extract_strided_slice %124 {offsets = [0, 0], sizes = [16, 64], strides = [1, 1]} : vector<18x64xf32> to vector<16x64xf32>
    %126 = vector.extract_strided_slice %124 {offsets = [1, 0], sizes = [16, 64], strides = [1, 1]} : vector<18x64xf32> to vector<16x64xf32>
    %127 = arith.addf %125, %126 : vector<16x64xf32>
    %128 = vector.extract_strided_slice %124 {offsets = [2, 0], sizes = [16, 64], strides = [1, 1]} : vector<18x64xf32> to vector<16x64xf32>
    %129 = arith.addf %127, %128 : vector<16x64xf32>
    %cst_20 = arith.constant 9.99999993E-9 : f32
    %130 = vector.broadcast %cst_20 : f32 to vector<16x64xf32>
    %131 = arith.addf %129, %130 : vector<16x64xf32>
    %132 = math.rsqrt %131 : vector<16x64xf32>
    %133 = arith.mulf %119, %132 : vector<16x64xf32>
    %c16 = arith.constant 16 : index
    %c0_21 = arith.constant 0 : index
    %134 = vector.load %arg6[%c16, %c0_21] : memref<32x128xf32, #tpu.memory_space<vmem>>, vector<16x64xf32>
    tpu.vector_store %arg6[%c16, %c0_21], %133 {strides = array<i32>} : memref<32x128xf32, #tpu.memory_space<vmem>>, vector<16x64xf32>,
    %c0_22 = arith.constant 0 : index
    %c0_23 = arith.constant 0 : index
    %135 = vector.load %arg6[%c0_22, %c0_23] : memref<32x128xf32, #tpu.memory_space<vmem>>, vector<32x128xf32>
    %136 = arith.truncf %135 : vector<32x128xf32> to vector<32x128xbf16>
    %c0_24 = arith.constant 0 : index
    %c0_25 = arith.constant 0 : index
    %137 = vector.load %arg3[%c0_24, %c0_25] : memref<128x128xbf16, #tpu.memory_space<vmem>>, vector<128x128xbf16>
    %cst_26 = arith.constant dense<0.000000e+00> : vector<32x128xf32>
    %138 = tpu.matmul %136, %137, %cst_26 {dimension_numbers = #tpu.dot_dimension_numbers<[1], [0], [0], [1], [0, 0, 1, 1], [], []>} : vector<32x128xbf16>, vector<128x128xbf16>, vector<32x128xf32> -> vector<32x128xf32>
    %139 = vector.extract_strided_slice %138 {offsets = [0, 0], sizes = [16, 128], strides = [1, 1]} : vector<32x128xf32> to vector<16x128xf32>
    %cst_27 = arith.constant dense<0.000000e+00> : vector<128xf32>
    %140 = vector.multi_reduction <add>, %139, %cst_27 [0] : vector<16x128xf32> to vector<128xf32>
    %141 = vector.shape_cast %140 : vector<128xf32> to vector<1x128xf32>
    %c8_i32 = arith.constant 8 : i32
    %142 = tpu.dynamic_rotate %141 by %c8_i32 dim 1 : vector<1x128xf32>, i32 -> vector<1x128xf32>
    %143 = arith.addf %141, %142 : vector<1x128xf32>
    %c16_i32 = arith.constant 16 : i32
    %144 = tpu.dynamic_rotate %143 by %c16_i32 dim 1 : vector<1x128xf32>, i32 -> vector<1x128xf32>
    %145 = arith.addf %143, %144 : vector<1x128xf32>
    %c32_i32 = arith.constant 32 : i32
    %146 = tpu.dynamic_rotate %145 by %c32_i32 dim 1 : vector<1x128xf32>, i32 -> vector<1x128xf32>
    %147 = arith.addf %145, %146 : vector<1x128xf32>
    %c64_i32 = arith.constant 64 : i32
    %148 = tpu.dynamic_rotate %147 by %c64_i32 dim 1 : vector<1x128xf32>, i32 -> vector<1x128xf32>
    %149 = arith.addf %147, %148 : vector<1x128xf32>
    %cst_28 = arith.constant 3.906250e-03 : f32
    %150 = vector.broadcast %cst_28 : f32 to vector<1x128xf32>
    %151 = arith.mulf %149, %150 : vector<1x128xf32>
    %152 = vector.broadcast %151 : vector<1x128xf32> to vector<16x128xf32>
    %153 = arith.subf %139, %152 : vector<16x128xf32>
    %c0_29 = arith.constant 0 : index
    %c0_30 = arith.constant 0 : index
    %c0_31 = arith.constant 0 : index
    %154 = vector.load %arg4[%c0_29, %c0_30, %c0_31] : memref<2x16x128xf32, #tpu.memory_space<vmem>>, vector<1x16x128xf32>
    %155 = vector.shape_cast %154 : vector<1x16x128xf32> to vector<16x128xf32>
    %156 = vector.shape_cast %153 : vector<16x128xf32> to vector<1x16x128xf32>
    tpu.vector_store %arg4[%c0_29, %c0_30, %c0_31], %156 {strides = array<i32>} : memref<2x16x128xf32, #tpu.memory_space<vmem>>, vector<1x16x128xf32>,
    %157 = vector.extract_strided_slice %138 {offsets = [16, 0], sizes = [16, 128], strides = [1, 1]} : vector<32x128xf32> to vector<16x128xf32>
    %cst_32 = arith.constant dense<0.000000e+00> : vector<128xf32>
    %158 = vector.multi_reduction <add>, %157, %cst_32 [0] : vector<16x128xf32> to vector<128xf32>
    %159 = vector.shape_cast %158 : vector<128xf32> to vector<1x128xf32>
    %c8_i32_33 = arith.constant 8 : i32
    %160 = tpu.dynamic_rotate %159 by %c8_i32_33 dim 1 : vector<1x128xf32>, i32 -> vector<1x128xf32>
    %161 = arith.addf %159, %160 : vector<1x128xf32>
    %c16_i32_34 = arith.constant 16 : i32
    %162 = tpu.dynamic_rotate %161 by %c16_i32_34 dim 1 : vector<1x128xf32>, i32 -> vector<1x128xf32>
    %163 = arith.addf %161, %162 : vector<1x128xf32>
    %c32_i32_35 = arith.constant 32 : i32
    %164 = tpu.dynamic_rotate %163 by %c32_i32_35 dim 1 : vector<1x128xf32>, i32 -> vector<1x128xf32>
    %165 = arith.addf %163, %164 : vector<1x128xf32>
    %c64_i32_36 = arith.constant 64 : i32
    %166 = tpu.dynamic_rotate %165 by %c64_i32_36 dim 1 : vector<1x128xf32>, i32 -> vector<1x128xf32>
    %167 = arith.addf %165, %166 : vector<1x128xf32>
    %cst_37 = arith.constant 3.906250e-03 : f32
    %168 = vector.broadcast %cst_37 : f32 to vector<1x128xf32>
    %169 = arith.mulf %167, %168 : vector<1x128xf32>
    %170 = vector.broadcast %169 : vector<1x128xf32> to vector<16x128xf32>
    %171 = arith.subf %157, %170 : vector<16x128xf32>
    %c1_38 = arith.constant 1 : index
    %c0_39 = arith.constant 0 : index
    %c0_40 = arith.constant 0 : index
    %172 = vector.load %arg4[%c1_38, %c0_39, %c0_40] : memref<2x16x128xf32, #tpu.memory_space<vmem>>, vector<1x16x128xf32>
    %173 = vector.shape_cast %172 : vector<1x16x128xf32> to vector<16x128xf32>
    %174 = vector.shape_cast %171 : vector<16x128xf32> to vector<1x16x128xf32>
    tpu.vector_store %arg4[%c1_38, %c0_39, %c0_40], %174 {strides = array<i32>} : memref<2x16x128xf32, #tpu.memory_space<vmem>>, vector<1x16x128xf32>,
    return
  }
  func.func @transform_0(%arg0: i32) -> (i32, i32, i32) {
    %c0_i32 = arith.constant 0 : i32
    %c0_i32_0 = arith.constant 0 : i32
    %c0_i32_1 = arith.constant 0 : i32
    return %arg0, %c0_i32, %c0_i32_0 : i32, i32, i32
  }
  func.func @transform_1(%arg0: i32) -> (i32, i32) {
    %c0_i32 = arith.constant 0 : i32
    %c0_i32_0 = arith.constant 0 : i32
    %c0_i32_1 = arith.constant 0 : i32
    return %c0_i32, %c0_i32_0 : i32, i32
  }
  func.func @transform_2(%arg0: i32) -> (i32, i32) {
    %c0_i32 = arith.constant 0 : i32
    %c0_i32_0 = arith.constant 0 : i32
    %c0_i32_1 = arith.constant 0 : i32
    return %c0_i32, %c0_i32_0 : i32, i32
  }
  func.func @transform_3(%arg0: i32) -> (i32, i32, i32) {
    %c0_i32 = arith.constant 0 : i32
    %c0_i32_0 = arith.constant 0 : i32
    %c0_i32_1 = arith.constant 0 : i32
    return %arg0, %c0_i32, %c0_i32_0 : i32, i32, i32
  }
}

</mosaic_0001>

<bundles_post_ra>
// kernel: tpu_custom_call.1
= control target key start
LH: loop header
LB: loop body
LE: loop exit
PB: predicated region body
PF: predicated region fallthrough
CT: control target
= control target key end

     0   :  { %8 = vsyncpa [#allocation5], 0  ;;  %s1249_s0 = inlined_call_operand.hbm [shape: f32[2,16,64], index: 0, kind: input, shape index: {}]   ;;  %s1250_s1 = inlined_call_operand.hbm [shape: f32[9,64], index: 1, kind: input, shape index: {}]   ;;  %s1251_s2 = inlined_call_operand.hbm [shape: bf16[128,128], index: 2, kind: input, shape index: {}]   ;;  %s1252_s3 = inlined_call_operand.hbm [shape: f32[2,16,128], index: 3, kind: output, shape index: {}]  }
   0x1   :  { %9 = vsyncpa [#allocation8], 0 }
   0x2   :  { %10 = vsyncpa [#allocation6], 0  ;;  %s906_s12 = smov [#allocation7]   ;;  %s907_s14 = smov [#allocation4]  }
   0x3   :  { %s28_s13 = sshll.u32 %s906_s12, 4  ;;  %s16_s15 = sshll.u32 %s907_s14, 4  ;;  %s29_s13 = int_to_ptr.vmem [resolvable:$true] %s28_s13  ;;  %s17_s15 = int_to_ptr.vmem [resolvable:$true] %s16_s15 }
   0x4   :  { %s828_s16 = scalar_lea.vmem %s29_s13, 256  ;;  %p833_p1 = scmp.lt.s32.totalorder %s29_s13, %s29_s13 }
   0x5   :  { %p829_p0 = scmp.ne.s32.totalorder %s29_s13, %s828_s16  ;;  %p834_p2 = scmp.lt.s32.totalorder %s828_s16, %s828_s16 }
   0x7   :  { %p835_p3 = por %p834_p2, %p833_p1 }
   0x9   :  { %p836_p4 = pnand %p835_p3, %p829_p0 }
   0xb   :  { %839 = shalt.err (!%p836_p4)
}
   0xc   :  { %s908_s17 = smov 128   ;;  %s909_s18 = smov 8  }
   0xd   :  { %34 = dma.hbm_to_vmem [thread:$0]  %s1250_s1, 256, %s29_s13, [#allocation8], %s908_s17, %s908_s17, %s909_s18  }
   0xe   :  { %s848_s21 = scalar_lea.vmem %s17_s15, 512  ;;  %p853_p6 = scmp.lt.s32.totalorder %s17_s15, %s17_s15 }
   0xf   :  { %p849_p5 = scmp.ne.s32.totalorder %s17_s15, %s848_s21  ;;  %p854_p7 = scmp.lt.s32.totalorder %s848_s21, %s848_s21 }
  0x11   :  { %p855_p8 = por %p854_p7, %p853_p6 }
  0x13   :  { %p856_p9 = pnand %p855_p8, %p849_p5 }
  0x15   :  { %859 = shalt.err (!%p856_p9)
}
  0x16   :  { %22 = dma.hbm_to_vmem [thread:$0]  %s1249_s0, 512, %s17_s15, [#allocation5], %s908_s17, %s908_s17, %s909_s18  }
  0x17   :  { %s910_s24 = smov [#allocation9]  }
  0x18   :  { %s40_s25 = sshll.u32 %s910_s24, 4  ;;  %s41_s25 = int_to_ptr.vmem [resolvable:$true] %s40_s25 }
  0x19   :  { %s868_s26 = scalar_lea.vmem %s41_s25, 1024  ;;  %p873_p11 = scmp.lt.s32.totalorder %s41_s25, %s41_s25 }
  0x1a   :  { %p869_p10 = scmp.ne.s32.totalorder %s41_s25, %s868_s26  ;;  %p874_p12 = scmp.lt.s32.totalorder %s868_s26, %s868_s26 }
  0x1c   :  { %p875_p13 = por %p874_p12, %p873_p11 }
  0x1e   :  { %p876_p0 = pnand %p875_p13, %p869_p10 }
  0x20   :  { %879 = shalt.err (!%p876_p0)
}
  0x21   :  { %s911_s1 = smov 64   ;;  %s912_s27 = smov 4  }
  0x22   :  { %46 = dma.hbm_to_vmem [thread:$0]  %s1251_s2, 1024, %s41_s25, [#allocation8], %s911_s1, %s911_s1, %s912_s27  }
  0x23   :  { %900 = dma.done.wait [#allocation5], 512  }
  0x24   :  { %901 = vsyncadd [#allocation5], 4294966784 }
  0x25   :  { %902 = dma.done.wait [#allocation8], 1280  }
  0x26   :  { %903 = vsyncadd [#allocation8], 4294966016  ;;  %v87_v0 = vlaneseq  ;;  %v913_v1 = vmov 0.0   ;;  %vm123_vm0 = vcmask 523264   ;;  %v85_v7 = vld [vmem:[#allocation7] sm:$0xff]  ;;  %v61_v8 = vld [vmem:[#allocation4 + $0x8] sm:$0xff] }
  0x27   :  { %58 = vst [vmem:[#allocation2 + $0x8] sm:$0xff] %v913_v1  ;;  %59 = vst [vmem:[#allocation2 + $0x10] sm:$0x3] %v913_v1  ;;  %v60_v9 = vld [vmem:[#allocation4] sm:$0xff]  ;;  %v965_v14 = vld [vmem:[#allocation4 + $0x10] sm:$0xff]  ;;  %s914_s0 = smov 124  }
  0x28   :  { %57 = vst [vmem:[#allocation2] sm:$0xff] %v913_v1  ;;  %v88_v2 = vshrl.u32 %v87_v0, 7  ;;  %125 = vst.msk [vmem:[#allocation2 + $0x9] sm:$0xff] %vm123_vm0, %v61_v8  ;;  %v967_v15 = vld [vmem:[#allocation4 + $0x18] sm:$0xff]  ;;  %v752_v28 = vld [vmem:[#allocation7 + $0x8] ss:$0 sm:$0xff] }
  0x29   :  { %124 = vst.msk [vmem:[#allocation2 + $0x1] sm:$0xff] %vm123_vm0, %v60_v9  ;;  %vm145_vm1 = vcmask 1046528   ;;  %vm161_vm2 = vcmask 1045504   ;;  %s915_s2 = smov 120   ;;  %vm80_vm3 = vcmask 1048064   ;;  %s916_s30 = smov 16  }
  0x2a   :  { %v105_v3 = vsub.s32 4, %v88_v2  ;;  %v93_v4 = vsub.s32 1, %v88_v2  ;;  %v101_v5 = vsub.s32 3, %v88_v2  ;;  %v113_v6 = vsub.s32 6, %v88_v2  ;;  %s917_s4 = smov 32   ;;  %s918_s5 = smov [#allocation10]  }
  0x2b   :  { %v117_v19 = vsub.s32 7, %v88_v2  ;;  %v97_v23 = vsub.s32 2, %v88_v2  ;;  %v109_v24 = vsub.s32 5, %v88_v2  ;;  %v987_v30 = vsub.s32 0, %v88_v2  ;;  %s739_s6 = sshll.u32 %s918_s5, 4  ;;  %s740_s6 = int_to_ptr.vmem [resolvable:$true] %s739_s6 }
  0x2c   :  { %v106_v10 = vrot.slane %v85_v7, %v105_v3  ;;  %v94_v11 = vrot.slane %v85_v7, %v93_v4  ;;  %v959_v12 = vrot.slane %v85_v7, %v101_v5  ;;  %v961_v13 = vrot.slane %v85_v7, %v113_v6  ;;  %s880_s7 = scalar_lea.vmem %s740_s6, 512  ;;  %p885_p2 = scmp.lt.s32.totalorder %s740_s6, %s740_s6 }
  0x2d   :  { %v118_v22 = vrot.slane %v85_v7, %v117_v19  ;;  %v98_v26 = vrot.slane %v85_v7, %v97_v23  ;;  %v110_v27 = vrot.slane %v85_v7, %v109_v24  ;;  %v992_v32 = vrot.slane %v85_v7, %v987_v30  ;;  %p881_p1 = scmp.ne.s32.totalorder %s740_s6, %s880_s7  ;;  %p886_p3 = scmp.lt.s32.totalorder %s880_s7, %s880_s7 }
  0x2e   :  { %188 = vrot.lane.b32.xlu0 %v106_v10, %s912_s27  ;;  %172 = vrot.lane.b32.xlu1 %v94_v11, %s912_s27 }
  0x2f   :  { %v128_v16 = vld [vmem:[#allocation2 + $0x10] sm:$0x3]  ;;  %p887_p4 = por %p886_p3, %p885_p2 }
  0x30   :  { %v126_v17 = vld [vmem:[#allocation2] sm:$0xff]  ;;  %v127_v18 = vld [vmem:[#allocation2 + $0x8] sm:$0xff] }
  0x31   :  { %355 = vst.msk [vmem:[#allocation2 + $0x9] sm:$0xff] %vm123_vm0, %v967_v15  ;;  %354 = vst.msk [vmem:[#allocation2 + $0x1] sm:$0xff] %vm123_vm0, %v965_v14  ;;  %p888_p5 = pnand %p887_p4, %p881_p1 }
  0x32   :  { %133 = vrot.lane.b32.xlu1 %v128_v16, %s912_s27  ;;  %129 = vrot.lane.b32.xlu0 %v126_v17, %s912_s27 }
  0x36   :  { %131 = vrot.lane.b32.xlu0 %v127_v18, %s912_s27 }
  0x38   :  { %v357_v20 = vld [vmem:[#allocation2 + $0x8] sm:$0xff]  ;;  %v356_v21 = vld [vmem:[#allocation2] sm:$0xff]  ;;  %v358_v25 = vld [vmem:[#allocation2 + $0x10] sm:$0x3] }
  0x39   :  { %359 = vrot.lane.b32.xlu1 %v356_v21, %s912_s27 }
  0x3a   :  { %361 = vrot.lane.b32.xlu0 %v357_v20, %s912_s27 }
  0x3d   :  { %363 = vrot.lane.b32.xlu1 %v358_v25, %s912_s27 }
  0x3e   :  { %211 = vrot.lane.b32.xlu0 %v118_v22, %s912_s27 }
  0x41   :  { %250 = vrot.lane.b32.xlu1 %v110_v27, %s909_s18 }
  0x42   :  { %234 = vrot.lane.b32.xlu0 %v98_v26, %s909_s18 }
  0x45   :  { %273 = vrot.lane.b32.xlu1 %v752_v28, %s909_s18 }
  0x46   :  { %68 = vrot.lane.b32.xlu0 %v60_v9, %s911_s1 }
  0x49   :  { %70 = vrot.lane.b32.xlu1 %v61_v8, %s911_s1 }
  0xa0   :  { %v985_v29 = vpop.permute.xlu0 %188  ;;  %v989_v31 = vpop.permute.xlu1 %172 }
  0xa4   :  { %v994_v33 = vpop.permute.xlu0 %129  ;;  %v996_v34 = vpop.permute.xlu1 %133 }
  0xa5   :  { %v1000_v35 = vmul.f32 %v994_v33, %v994_v33  ;;  %v141_v36 = vmul.f32 %v996_v34, %v959_v12  ;;  %v157_v37 = vmul.f32 %v996_v34, %v961_v13  ;;  %v135_v38 = vmul.f32 %v994_v33, %v992_v32 }
  0xa6   :  { %v1012_v39 = vmul.f32 %v996_v34, %v996_v34  ;;  %v139_v40 = vmul.f32 %v994_v33, %v959_v12  ;;  %v1018_v41 = vmul.f32 %v994_v33, %v961_v13  ;;  %v193_v1 = vmul.f32 %v985_v29, %v996_v34 }
  0xa7   :  { %301 = vrot.lane.b32.xlu0 %v1000_v35, %s914_s0  ;;  %v149_v47 = vrot.slane %v141_v36, 1  ;;  %v165_v48 = vrot.slane %v157_v37, 2  ;;  %v175_v3 = vmul.f32 %v989_v31, %v994_v33  ;;  %v191_v11 = vmul.f32 %v985_v29, %v994_v33 }
  0xa8   :  { %v132_v42 = vpop.permute.xlu0 %131  ;;  %v146_v53 = vrot.slane %v139_v40, 1  ;;  %v200_v10 = vrot.slane %v193_v1, 1  ;;  %v162_v25 = vrot.slane %v1018_v41, 2 }
  0xa9   :  { %v1020_v43 = vmul.f32 %v132_v42, %v132_v42  ;;  %v136_v44 = vmul.f32 %v132_v42, %v992_v32  ;;  %v140_v45 = vmul.f32 %v132_v42, %v959_v12  ;;  %v1025_v46 = vmul.f32 %v132_v42, %v961_v13 }
  0xaa   :  { %v176_v61 = vmul.f32 %v989_v31, %v132_v42  ;;  %v192_v62 = vmul.f32 %v985_v29, %v132_v42  ;;  %v197_v26 = vrot.slane %v191_v11, 1 }
  0xab   :  { %305 = vrot.lane.b32.xlu0 %v1012_v39, %s914_s0  ;;  %303 = vrot.lane.b32.xlu1 %v1020_v43, %s914_s0  ;;  %v1033_v50 = vpop.permute.xlu1 %359  ;;  %v147_v51 = vrot.slane %v140_v45, 1  ;;  %v163_v52 = vrot.slane %v1025_v46, 2 }
  0xac   :  { %v1031_v49 = vpop.permute.xlu0 %361  ;;  %v198_v5 = vrot.slane %v192_v62, 1 }
  0xad   :  { %v150_v54 = vsel %vm145_vm1, %v147_v51, %v149_v47  ;;  %v166_v55 = vsel %vm161_vm2, %v163_v52, %v165_v48  ;;  %v148_v56 = vsel %vm145_vm1, %v146_v53, %v147_v51  ;;  %v365_v48 = vmul.f32 %v1033_v50, %v992_v32 }
  0xae   :  { %v154_v59 = vadd.f32 %v150_v54, %v136_v44  ;;  %v153_v60 = vadd.f32 %v148_v56, %v135_v38  ;;  %v201_v20 = vsel %vm145_vm1, %v198_v5, %v200_v10  ;;  %v164_v38 = vsel %vm161_vm2, %v162_v25, %v163_v52 }
  0xaf   :  { %313 = vrot.lane.b32.xlu0 %v1000_v35, %s915_s2  ;;  %315 = vrot.lane.b32.xlu1 %v1020_v43, %s915_s2  ;;  %v1045_v58 = vpop.permute.xlu1 %363  ;;  %v199_v40 = vsel %vm145_vm1, %v197_v26, %v198_v5  ;;  %v369_v53 = vmul.f32 %v1033_v50, %v959_v12  ;;  %v384_v54 = vmul.f32 %v1033_v50, %v961_v13 }
  0xb0   :  { %v1043_v57 = vpop.permute.xlu0 %211  ;;  %v1058_v2 = vadd.f32 %v166_v55, %v154_v59  ;;  %v1098_v47 = vadd.f32 %v164_v38, %v153_v60  ;;  %v366_v55 = vmul.f32 %v1031_v49, %v992_v32  ;;  %v371_v56 = vmul.f32 %v1045_v58, %v959_v12 }
  0xb1   :  { %v215_v6 = vmul.f32 %v1043_v57, %v132_v42  ;;  %v216_v7 = vmul.f32 %v1043_v57, %v996_v34  ;;  %v214_v8 = vmul.f32 %v1043_v57, %v994_v33  ;;  %v375_v60 = vrot.slane %v369_v53, 1 }
  0xb2   :  { %v386_v62 = vmul.f32 %v1045_v58, %v961_v13  ;;  %v390_v1 = vrot.slane %v384_v54, 2  ;;  %v411_v25 = vmul.f32 %v1033_v50, %v985_v29  ;;  %v412_v26 = vmul.f32 %v1031_v49, %v985_v29 }
  0xb3   :  { %317 = vrot.lane.b32.xlu0 %v1012_v39, %s915_s2  ;;  %181 = vrot.lane.b32.xlu1 %v176_v61, %s914_s0  ;;  %v1054_v0 = vpop.permute.xlu1 %250  ;;  %v221_v21 = vrot.slane %v215_v6, 2  ;;  %v223_v22 = vrot.slane %v216_v7, 2  ;;  %v220_v23 = vrot.slane %v214_v8, 2  ;;  %v430_v38 = vmul.f32 %v1033_v50, %v1043_v57 }
  0xb4   :  { %v1052_v63 = vpop.permute.xlu0 %234  ;;  %v254_v16 = vmul.f32 %v1054_v0, %v132_v42  ;;  %v255_v17 = vmul.f32 %v1054_v0, %v996_v34  ;;  %v253_v24 = vmul.f32 %v1054_v0, %v994_v33  ;;  %v393_v6 = vrot.slane %v386_v62, 2 }
  0xb5   :  { %v238_v4 = vmul.f32 %v1052_v63, %v132_v42  ;;  %v237_v19 = vmul.f32 %v1052_v63, %v994_v33  ;;  %v224_v44 = vsel %vm161_vm2, %v221_v21, %v223_v22  ;;  %v222_v45 = vsel %vm161_vm2, %v220_v23, %v221_v21 }
  0xb6   :  { %v260_v27 = vrot.slane %v254_v16, 1  ;;  %v262_v28 = vrot.slane %v255_v17, 1  ;;  %v259_v41 = vrot.slane %v253_v24, 1  ;;  %v1141_v21 = vmul.f32 %v1045_v58, %v1045_v58  ;;  %v804_v24 = vld [vmem:[#allocation9 + $0x38] sm:$0xff]  }
  0xb7   :  { %179 = vrot.lane.b32.xlu0 %v175_v3, %s914_s0  ;;  %243 = vrot.lane.b32.xlu1 %v238_v4, %s915_s2  ;;  %v1070_v9 = vpop.permute.xlu1 %273  ;;  %v378_v4 = vrot.slane %v371_v56, 1  ;;  %v1145_v22 = vmul.f32 %v1031_v49, %v1031_v49  ;;  %v399_v23 = vmul.f32 %v1033_v50, %v989_v31  ;;  %v462_v53 = vmul.f32 %v1031_v49, %v1054_v0 }
  0xb8   :  { %v69_v18 = vpop.permute.xlu0 %68  ;;  %v277_v36 = vmul.f32 %v1070_v9, %v132_v42  ;;  %v278_v46 = vmul.f32 %v1070_v9, %v996_v34  ;;  %v276_v42 = vmul.f32 %v1070_v9, %v994_v33  ;;  %v263_v51 = vsel %vm145_vm1, %v260_v27, %v262_v28  ;;  %771 = vmatprep.subr.bf16.mxu0 %v804_v24 }
  0xb9   :  { %81 = vst.msk [vmem:[#allocation3] sm:$0xff] %vm80_vm3, %v69_v18  ;;  %v370_v34 = vmul.f32 %v1031_v49, %v959_v12  ;;  %v385_v33 = vmul.f32 %v1031_v49, %v961_v13  ;;  %v261_v32 = vsel %vm145_vm1, %v259_v41, %v260_v27  ;;  %v805_v27 = vld [vmem:[#allocation9 + $0x30] sm:$0xff]   ;;  %v413_v28 = vmul.f32 %v1045_v58, %v985_v29 }
  0xba   :  { %v283_v52 = vrot.slane %v277_v36, 2  ;;  %v285_v59 = vrot.slane %v278_v46, 2  ;;  %v282_v13 = vrot.slane %v276_v42, 2  ;;  %v400_v36 = vmul.f32 %v1031_v49, %v989_v31  ;;  %772 = vmatpush3.bf16.msra.mxu0 %v804_v24  ;;  %v806_v46 = vld [vmem:[#allocation9 + $0x28] sm:$0xff]  }
  0xbb   :  { %241 = vrot.lane.b32.xlu0 %v237_v19, %s915_s2  ;;  %204 = vrot.lane.b32.xlu1 %v201_v20, %s914_s0  ;;  %v71_v37 = vpop.permute.xlu1 %70  ;;  %v376_v61 = vrot.slane %v370_v34, 1  ;;  %v391_v3 = vrot.slane %v385_v33, 2  ;;  %v1133_v19 = vmul.f32 %v1033_v50, %v1033_v50  ;;  %v420_v29 = vrot.slane %v413_v28, 1  ;;  %v807_v34 = vld [vmem:[#allocation9 + $0x20] sm:$0xff]  }
  0xbc   :  { %82 = vst.msk [vmem:[#allocation3 + $0x8] sm:$0xff] %vm80_vm3, %v71_v37  ;;  %v286_v10 = vsel %vm161_vm2, %v283_v52, %v285_v59  ;;  %v284_v20 = vsel %vm161_vm2, %v282_v13, %v283_v52  ;;  %v449_v37 = vmul.f32 %v1033_v50, %v1052_v63  ;;  %773 = vmatprep.subr.bf16.mxu0 %v805_v27  ;;  %v436_v42 = vrot.slane %v430_v38, 2 }
  0xbd   :  { %v377_v5 = vsel %vm145_vm1, %v375_v60, %v376_v61  ;;  %v392_v12 = vsel %vm161_vm2, %v390_v1, %v391_v3  ;;  %v379_v8 = vsel %vm145_vm1, %v376_v61, %v378_v4  ;;  %v394_v16 = vsel %vm161_vm2, %v391_v3, %v393_v6  ;;  %v808_v61 = vld [vmem:[#allocation9 + $0x18] sm:$0xff]  }
  0xbe   :  { %v382_v7 = vadd.f32 %v377_v5, %v365_v48  ;;  %v383_v11 = vadd.f32 %v379_v8, %v366_v55  ;;  %v432_v31 = vmul.f32 %v1045_v58, %v1043_v57  ;;  %v450_v41 = vmul.f32 %v1031_v49, %v1052_v63  ;;  %774 = vmatpush3.bf16.msra.mxu0 %v805_v27  ;;  %v809_v5 = vld [vmem:[#allocation9 + $0x10] sm:$0xff]  }
  0xbf   :  { %202 = vrot.lane.b32.xlu0 %v199_v40, %s914_s0  ;;  %227 = vrot.lane.b32.xlu1 %v224_v44, %s914_s0  ;;  %v431_v40 = vmul.f32 %v1031_v49, %v1043_v57  ;;  %v417_v44 = vrot.slane %v411_v25, 1  ;;  %v468_v55 = vrot.slane %v462_v53, 1  ;;  %v463_v56 = vmul.f32 %v1045_v58, %v1054_v0 }
  0xc0   :  { %v1127_v17 = vadd.f32 %v392_v12, %v382_v7  ;;  %v1129_v18 = vadd.f32 %v394_v16, %v383_v11  ;;  %775 = vmatprep.subr.bf16.mxu0 %v806_v46  ;;  %v439_v54 = vrot.slane %v432_v31, 2  ;;  %v480_v59 = vmul.f32 %v1033_v50, %v1070_v9  ;;  %v811_v7 = vld [vmem:[#allocation9] sm:$0xff]  }
  0xc1   :  { %v437_v48 = vrot.slane %v431_v40, 2  ;;  %v481_v60 = vmul.f32 %v1031_v49, %v1070_v9  ;;  %v482_v1 = vmul.f32 %v1045_v58, %v1070_v9  ;;  %v470_v3 = vrot.slane %v463_v56, 1  ;;  %v810_v58 = vld [vmem:[#allocation9 + $0x8] sm:$0xff]  }
  0xc2   :  { %776 = vmatpush3.bf16.msra.mxu0 %v806_v46  ;;  %v486_v4 = vrot.slane %v480_v59, 2 }
  0xc3   :  { %225 = vrot.lane.b32.xlu0 %v222_v45, %s914_s0  ;;  %266 = vrot.lane.b32.xlu1 %v263_v51, %s915_s2  ;;  %v418_v45 = vrot.slane %v412_v26, 1  ;;  %v461_v51 = vmul.f32 %v1033_v50, %v1054_v0  ;;  %v438_v63 = vsel %vm161_vm2, %v436_v42, %v437_v48  ;;  %v440_v62 = vsel %vm161_vm2, %v437_v48, %v439_v54 }
  0xc4   :  { %777 = vmatprep.subr.bf16.mxu0 %v807_v34  ;;  %v487_v50 = vrot.slane %v481_v60, 2  ;;  %v471_v49 = vsel %vm145_vm1, %v468_v55, %v470_v3 }
  0xc5   :  { %v419_v52 = vsel %vm145_vm1, %v417_v44, %v418_v45  ;;  %v421_v57 = vsel %vm145_vm1, %v418_v45, %v420_v29  ;;  %v467_v33 = vrot.slane %v461_v51, 1 }
  0xc6   :  { %778 = vmatpush3.bf16.msra.mxu0 %v807_v34  ;;  %v488_v6 = vsel %vm161_vm2, %v486_v4, %v487_v50 }
  0xc7   :  { %264 = vrot.lane.b32.xlu0 %v261_v32, %s915_s2  ;;  %289 = vrot.lane.b32.xlu1 %v286_v10, %s915_s2  ;;  %v469_v0 = vsel %vm145_vm1, %v467_v33, %v468_v55  ;;  %v489_v32 = vrot.slane %v482_v1, 2 }
  0xc8   :  { %779 = vmatprep.subr.bf16.mxu0 %v808_v61 }
  0xc9   :  { %v490_v9 = vsel %vm161_vm2, %v487_v50, %v489_v32 }
  0xca   :  { %780 = vmatpush3.bf16.msra.mxu0 %v808_v61 }
  0xcb   :  { %505 = vrot.lane.b32.xlu1 %v1133_v19, %s914_s0  ;;  %287 = vrot.lane.b32.xlu0 %v284_v20, %s915_s2 }
  0xcc   :  { %781 = vmatprep.subr.bf16.mxu0 %v809_v5 }
  0xce   :  { %782 = vmatpush3.bf16.msra.mxu0 %v809_v5 }
  0xcf   :  { %509 = vrot.lane.b32.xlu1 %v1141_v21, %s914_s0  ;;  %507 = vrot.lane.b32.xlu0 %v1145_v22, %s914_s0 }
  0xd0   :  { %783 = vmatprep.subr.bf16.mxu0 %v810_v58 }
  0xd2   :  { %784 = vmatpush3.bf16.msra.mxu0 %v810_v58 }
  0xd3   :  { %517 = vrot.lane.b32.xlu1 %v1133_v19, %s915_s2  ;;  %519 = vrot.lane.b32.xlu0 %v1145_v22, %s915_s2 }
  0xd4   :  { %785 = vmatprep.subr.bf16.mxu0 %v811_v7 }
  0xd6   :  { %786 = vmatpush3.bf16.msra.mxu0 %v811_v7 }
  0xd7   :  { %521 = vrot.lane.b32.xlu1 %v1141_v21, %s915_s2  ;;  %403 = vrot.lane.b32.xlu0 %v399_v23, %s914_s0 }
  0xdb   :  { %405 = vrot.lane.b32.xlu1 %v400_v36, %s914_s0  ;;  %453 = vrot.lane.b32.xlu0 %v449_v37, %s915_s2 }
  0xdf   :  { %455 = vrot.lane.b32.xlu1 %v450_v41, %s915_s2  ;;  %422 = vrot.lane.b32.xlu0 %v419_v52, %s914_s0 }
  0xe3   :  { %424 = vrot.lane.b32.xlu1 %v421_v57, %s914_s0  ;;  %441 = vrot.lane.b32.xlu0 %v438_v63, %s914_s0 }
  0xe7   :  { %443 = vrot.lane.b32.xlu1 %v440_v62, %s914_s0  ;;  %472 = vrot.lane.b32.xlu0 %v469_v0, %s915_s2 }
  0xeb   :  { %474 = vrot.lane.b32.xlu1 %v471_v49, %s915_s2  ;;  %491 = vrot.lane.b32.xlu0 %v488_v6, %s915_s2 }
  0xef   :  { %493 = vrot.lane.b32.xlu1 %v490_v9, %s915_s2  ;;  %72 = vrot.lane.b32.xlu0 %v965_v14, %s911_s1 }
  0xf3   :  { %74 = vrot.lane.b32.xlu1 %v967_v15, %s911_s1 }
 0x119   :  { %v302_v12 = vpop.permute.xlu0 %301 }
 0x11a   :  { %v310_v13 = vadd.f32 %v302_v12, %v1000_v35 }
 0x11d   :  { %v306_v8 = vpop.permute.xlu0 %305  ;;  %v304_v10 = vpop.permute.xlu1 %303 }
 0x11e   :  { %v311_v11 = vadd.f32 %v304_v10, %v1020_v43  ;;  %v312_v25 = vadd.f32 %v306_v8, %v1012_v39 }
 0x121   :  { %v314_v16 = vpop.permute.xlu0 %313  ;;  %v316_v20 = vpop.permute.xlu1 %315 }
 0x122   :  { %v322_v23 = vadd.f32 %v314_v16, %v310_v13  ;;  %v323_v24 = vadd.f32 %v316_v20, %v311_v11 }
 0x124   :  { %v328_v14 = vrot.slane %v322_v23, 1  ;;  %v329_v26 = vrot.slane %v323_v24, 1  ;;  %v337_v27 = vrot.slane %v322_v23, 2  ;;  %v338_v28 = vrot.slane %v323_v24, 2 }
 0x125   :  { %v318_v36 = vpop.permute.xlu0 %317  ;;  %v182_v15 = vpop.permute.xlu1 %181 }
 0x126   :  { %v330_v37 = vsel %vm145_vm1, %v328_v14, %v329_v26  ;;  %v324_v38 = vadd.f32 %v318_v36, %v312_v25  ;;  %v339_v43 = vsel %vm161_vm2, %v337_v27, %v338_v28  ;;  %v186_v34 = vadd.f32 %v182_v15, %v1058_v2 }
 0x127   :  { %v335_v40 = vadd.f32 %v330_v37, %v322_v23 }
 0x128   :  { %v331_v44 = vrot.slane %v324_v38, 1  ;;  %v340_v35 = vrot.slane %v324_v38, 2 }
 0x129   :  { %v180_v45 = vpop.permute.xlu0 %179  ;;  %v244_v46 = vpop.permute.xlu1 %243  ;;  %v344_v29 = vadd.f32 %v339_v43, %v335_v40 }
 0x12a   :  { %v332_v31 = vsel %vm145_vm1, %v329_v26, %v331_v44  ;;  %v341_v41 = vsel %vm161_vm2, %v338_v28, %v340_v35  ;;  %v185_v33 = vadd.f32 %v180_v45, %v1098_v47 }
 0x12b   :  { %v336_v39 = vadd.f32 %v332_v31, %v323_v24  ;;  %v346_v52 = vadd.f32 1e-08, %v344_v29 }
 0x12d   :  { %v345_v42 = vadd.f32 %v341_v41, %v336_v39  ;;  %v242_v48 = vpop.permute.xlu0 %241  ;;  %v205_v51 = vpop.permute.xlu1 %204 }
 0x12e   :  { %v209_v57 = vadd.f32 %v205_v51, %v186_v34 }
 0x12f   :  { %v347_v53 = vadd.f32 1e-08, %v345_v42 }
 0x131   :  { %812 = vrsqrt.f32 %v347_v53  ;;  %v203_v63 = vpop.permute.xlu0 %202  ;;  %v228_v54 = vpop.permute.xlu1 %227 }
 0x132   :  { %814 = vrsqrt.f32 %v346_v52  ;;  %v232_v55 = vadd.f32 %v228_v54, %v209_v57  ;;  %v208_v56 = vadd.f32 %v203_v63, %v185_v33 }
 0x134   :  { %v248_v62 = vadd.f32 %v244_v46, %v232_v55 }
 0x135   :  { %v226_v59 = vpop.permute.xlu0 %225  ;;  %v267_v60 = vpop.permute.xlu1 %266 }
 0x136   :  { %v231_v61 = vadd.f32 %v226_v59, %v208_v56  ;;  %v271_v4 = vadd.f32 %v267_v60, %v248_v62 }
 0x138   :  { %v247_v1 = vadd.f32 %v242_v48, %v231_v61 }
 0x139   :  { %v265_v0 = vpop.permute.xlu0 %264  ;;  %v290_v3 = vpop.permute.xlu1 %289 }
 0x13a   :  { %v270_v50 = vadd.f32 %v265_v0, %v247_v1  ;;  %v294_v5 = vadd.f32 %v290_v3, %v271_v4 }
 0x13d   :  { %v288_v2 = vpop.permute.xlu0 %287  ;;  %v506_v49 = vpop.permute.xlu1 %505 }
 0x13e   :  { %v813_v6 = vpop.eup %812  ;;  %v293_v32 = vadd.f32 %v288_v2, %v270_v50  ;;  %v514_v8 = vadd.f32 %v506_v49, %v1133_v19 }
 0x13f   :  { %v815_v58 = vpop.eup %814  ;;  %v351_v9 = vmul.f32 %v813_v6, %v294_v5 }
 0x140   :  { %v350_v7 = vmul.f32 %v815_v58, %v293_v32 }
 0x141   :  { %353 = vst.msk [vmem:[#allocation3 + $0x8] sm:$0xff] %vm123_vm0, %v351_v9  ;;  %v508_v47 = vpop.permute.xlu0 %507  ;;  %v510_v12 = vpop.permute.xlu1 %509 }
 0x142   :  { %352 = vst.msk [vmem:[#allocation3] sm:$0xff] %vm123_vm0, %v350_v7  ;;  %v515_v10 = vadd.f32 %v508_v47, %v1145_v22  ;;  %v516_v23 = vadd.f32 %v510_v12, %v1141_v21 }
 0x145   :  { %v520_v13 = vpop.permute.xlu0 %519  ;;  %v518_v11 = vpop.permute.xlu1 %517 }
 0x146   :  { %v527_v16 = vadd.f32 %v520_v13, %v515_v10  ;;  %v526_v20 = vadd.f32 %v518_v11, %v514_v8 }
 0x148   :  { %v533_v24 = vrot.slane %v527_v16, 1  ;;  %v542_v25 = vrot.slane %v527_v16, 2  ;;  %v532_v14 = vrot.slane %v526_v20, 1  ;;  %v541_v26 = vrot.slane %v526_v20, 2  ;;  %v559_v27 = vld [vmem:[#allocation3 + $0x8] sm:$0xff] }
 0x149   :  { %v404_v28 = vpop.permute.xlu0 %403  ;;  %v522_v36 = vpop.permute.xlu1 %521  ;;  %v558_v15 = vld [vmem:[#allocation3] sm:$0xff] }
 0x14a   :  { %v534_v37 = vsel %vm145_vm1, %v532_v14, %v533_v24  ;;  %v528_v38 = vadd.f32 %v522_v36, %v516_v23  ;;  %v562_v40 = vpack.c.bf16 %v559_v27, %v558_v15  ;;  %v543_v22 = vsel %vm161_vm2, %v541_v26, %v542_v25 }
 0x14b   :  { %v539_v19 = vadd.f32 %v534_v37, %v526_v20  ;;  %v409_v51 = vadd.f32 %v404_v28, %v1127_v17 }
 0x14c   :  { %v535_v44 = vrot.slane %v528_v38, 1  ;;  %v544_v35 = vrot.slane %v528_v38, 2  ;;  %787 = vmatprep.mubr.bf16.mxu0 %v562_v40 }
 0x14d   :  { %v548_v43 = vadd.f32 %v543_v22, %v539_v19  ;;  %v454_v21 = vpop.permute.xlu0 %453  ;;  %v406_v45 = vpop.permute.xlu1 %405 }
 0x14e   :  { %v536_v46 = vsel %vm145_vm1, %v533_v24, %v535_v44  ;;  %v545_v39 = vsel %vm161_vm2, %v542_v25, %v544_v35  ;;  %v410_v63 = vadd.f32 %v406_v45, %v1129_v18 }
 0x14f   :  { %v550_v29 = vadd.f32 1e-08, %v548_v43  ;;  %v540_v31 = vadd.f32 %v536_v46, %v527_v16 }
 0x151   :  { %816 = vrsqrt.f32 %v550_v29  ;;  %v549_v41 = vadd.f32 %v545_v39, %v540_v31  ;;  %v423_v42 = vpop.permute.xlu0 %422  ;;  %v456_v48 = vpop.permute.xlu1 %455 }
 0x152   :  { %v428_v53 = vadd.f32 %v423_v42, %v409_v51 }
 0x153   :  { %v551_v52 = vadd.f32 1e-08, %v549_v41 }
 0x155   :  { %818 = vrsqrt.f32 %v551_v52  ;;  %v442_v34 = vpop.permute.xlu0 %441  ;;  %v425_v57 = vpop.permute.xlu1 %424 }
 0x156   :  { %v447_v54 = vadd.f32 %v442_v34, %v428_v53  ;;  %v429_v33 = vadd.f32 %v425_v57, %v410_v63 }
 0x158   :  { %v459_v55 = vadd.f32 %v454_v21, %v447_v54 }
 0x159   :  { %v473_v56 = vpop.permute.xlu0 %472  ;;  %v444_v59 = vpop.permute.xlu1 %443 }
 0x15a   :  { %v448_v60 = vadd.f32 %v444_v59, %v429_v33  ;;  %v478_v61 = vadd.f32 %v473_v56, %v459_v55 }
 0x15c   :  { %v460_v62 = vadd.f32 %v456_v48, %v448_v60 }
 0x15d   :  { %v492_v1 = vpop.permute.xlu0 %491  ;;  %v475_v0 = vpop.permute.xlu1 %474 }
 0x15e   :  { %v817_v3 = vpop.eup %816  ;;  %v497_v4 = vadd.f32 %v492_v1, %v478_v61  ;;  %v479_v50 = vadd.f32 %v475_v0, %v460_v62 }
 0x160   :  { %v554_v17 = vmul.f32 %v817_v3, %v497_v4 }
 0x161   :  { %v73_v5 = vpop.permute.xlu0 %72  ;;  %v494_v2 = vpop.permute.xlu1 %493 }
 0x162   :  { %v819_v49 = vpop.eup %818  ;;  %83 = vst.msk [vmem:[#allocation3 + $0x10] sm:$0xff] %vm80_vm3, %v73_v5  ;;  %v498_v18 = vadd.f32 %v494_v2, %v479_v50 }
 0x163   :  { %556 = vst.msk [vmem:[#allocation3 + $0x10] sm:$0xff] %vm123_vm0, %v554_v17 }
 0x164   :  { %v555_v6 = vmul.f32 %v819_v49, %v498_v18 }
 0x165   :  { %v75_v32 = vpop.permute.xlu1 %74 }
 0x166   :  { %84 = vst.msk [vmem:[#allocation3 + $0x18] sm:$0xff] %vm80_vm3, %v75_v32 }
 0x167   :  { %557 = vst.msk [vmem:[#allocation3 + $0x18] sm:$0xff] %vm123_vm0, %v555_v6 }
 0x16a   :  { %v560_v58 = vld [vmem:[#allocation3 + $0x10] sm:$0xff] }
 0x16e   :  { %v561_v9 = vld [vmem:[#allocation3 + $0x18] sm:$0xff] }
 0x16f   :  { %v563_v7 = vpack.c.bf16 %v561_v9, %v560_v58 }
 0x171   :  { %788 = vmatmul.mubr.bf16.vlgmr.msra.gmra.mxu0 %v563_v7 }
 0x231   :  { %v789_v47 = vpop.f32.mrf.mxu0 }
 0x233   :  { %v662_v12 = vpop.f32.mrf.mxu0 }
 0x235   :  { %v790_v8 = vpop.f32.mrf.mxu0 }
 0x236   :  { %v705_v10 = vadd.f32 %v790_v8, %v789_v47 }
 0x237   :  { %v665_v13 = vpop.f32.mrf.mxu0 }
 0x238   :  { %v706_v11 = vrot.slane %v705_v10, 4  ;;  %v677_v16 = vadd.f32 %v665_v13, %v662_v12 }
 0x23a   :  { %v707_v20 = vadd.f32 %v706_v11, %v705_v10  ;;  %v678_v23 = vrot.slane %v677_v16, 4 }
 0x23c   :  { %v679_v24 = vadd.f32 %v678_v23, %v677_v16  ;;  %v708_v25 = vrot.slane %v707_v20, 2 }
 0x23e   :  { %v680_v14 = vrot.slane %v679_v24, 2  ;;  %v709_v26 = vadd.f32 %v708_v25, %v707_v20 }
 0x240   :  { %v710_v27 = vrot.slane %v709_v26, 1  ;;  %v681_v28 = vadd.f32 %v680_v14, %v679_v24 }
 0x242   :  { %v711_v36 = vadd.f32 %v710_v27, %v709_v26  ;;  %v682_v15 = vrot.slane %v681_v28, 1 }
 0x244   :  { %712 = vrot.lane.b32.xlu1 %v711_v36, %s909_s18  ;;  %v683_v37 = vadd.f32 %v682_v15, %v681_v28 }
 0x246   :  { %684 = vrot.lane.b32.xlu0 %v683_v37, %s909_s18 }
 0x2b6   :  { %v713_v38 = vpop.permute.xlu1 %712 }
 0x2b7   :  { %v714_v19 = vadd.f32 %v713_v38, %v711_v36 }
 0x2b8   :  { %v685_v40 = vpop.permute.xlu0 %684 }
 0x2b9   :  { %v686_v22 = vadd.f32 %v685_v40, %v683_v37  ;;  %715 = vrot.lane.b32.xlu1 %v714_v19, %s916_s30 }
 0x2bb   :  { %687 = vrot.lane.b32.xlu0 %v686_v22, %s916_s30 }
 0x32b   :  { %v716_v44 = vpop.permute.xlu1 %715 }
 0x32c   :  { %v717_v35 = vadd.f32 %v716_v44, %v714_v19 }
 0x32d   :  { %v688_v43 = vpop.permute.xlu0 %687 }
 0x32e   :  { %v689_v21 = vadd.f32 %v688_v43, %v686_v22  ;;  %718 = vrot.lane.b32.xlu1 %v717_v35, %s917_s4 }
 0x330   :  { %690 = vrot.lane.b32.xlu0 %v689_v21, %s917_s4 }
 0x3a0   :  { %v719_v45 = vpop.permute.xlu1 %718 }
 0x3a1   :  { %v720_v46 = vadd.f32 %v719_v45, %v717_v35 }
 0x3a2   :  { %v691_v29 = vpop.permute.xlu0 %690 }
 0x3a3   :  { %v692_v31 = vadd.f32 %v691_v29, %v689_v21  ;;  %721 = vrot.lane.b32.xlu1 %v720_v46, %s911_s1 }
 0x3a5   :  { %693 = vrot.lane.b32.xlu0 %v692_v31, %s911_s1 }
 0x415   :  { %v722_v39 = vpop.permute.xlu1 %721 }
 0x416   :  { %v723_v41 = vadd.f32 %v722_v39, %v720_v46 }
 0x417   :  { %v694_v42 = vpop.permute.xlu0 %693 }
 0x418   :  { %v724_v48 = vmul.f32 0.00390625, %v723_v41  ;;  %v695_v51 = vadd.f32 %v694_v42, %v692_v31 }
 0x41a   :  { %v728_v52 = vrot.slane %v724_v48, %v987_v30  ;;  %v696_v53 = vmul.f32 0.00390625, %v695_v51 }
 0x41c   :  { %v729_v34 = vsub.f32 %v789_v47, %v728_v52  ;;  %v730_v57 = vsub.f32 %v790_v8, %v728_v52  ;;  %v700_v63 = vrot.slane %v696_v53, %v987_v30 }
 0x41e   :  { %732 = vst [vmem:[#allocation10 + $0x10] sm:$0xff] %v729_v34  ;;  %733 = vst [vmem:[#allocation10 + $0x18] sm:$0xff] %v730_v57  ;;  %v701_v54 = vsub.f32 %v662_v12, %v700_v63  ;;  %v702_v33 = vsub.f32 %v665_v13, %v700_v63 }
 0x420   :  { %703 = vst [vmem:[#allocation10] sm:$0xff] %v701_v54  ;;  %704 = vst [vmem:[#allocation10 + $0x8] sm:$0xff] %v702_v33 }
 0x421   :  { %891 = shalt.err (!%p888_p5)
}
 0x422   :  { %745 = dma.vmem_to_hbm [thread:$0]  %s740_s6, 512, %s1252_s3, [#allocation6], %s908_s17, %s908_s17, %s909_s18  }
 0x423   :  { %904 = dma.done.wait [#allocation6], 512  }
 0x424   :  { %905 = vsyncadd [#allocation6], 4294966784 }
 0x425   :  { %749 = vsyncpa [#allocation5], 1 }
 0x426   :  { %750 = vsyncpa [#allocation8], 1 }
 0x427   :  { %751 = vsyncpa [#allocation6], 1 }

</bundles_post_ra>
